<compile_context>
chip_gen: v6e
topology: v6e:2x2x1
jax: 0.10.0
libtpu: 0.0.40
codegen_flags: <defaults>
</compile_context>

<pallas_src>
import math

import jax
import jax.numpy as jnp
from jax.experimental import pallas as pl
from jax.experimental.pallas import tpu as pltpu


def _round_up(x: int, m: int) -> int:
    return ((x + m - 1) // m) * m


def _pick_tile(total: int, unit: int, target: int):
    """Tile size (multiple of `unit`) for an axis of natural length `total`.

    The axis is padded up to a multiple of the chosen tile.  Minimal padding
    (wasted HBM writes) is weighted heavily; proximity to `target` is a soft
    preference.  Returns (tile, padded_total)."""
    total = max(int(total), 1)
    min_padded = _round_up(total, unit)
    target = max(unit, min(int(target), min_padded))
    best_tile, best_score = unit, None
    tile = unit
    while tile <= min_padded:
        padded = -(-total // tile) * tile
        score = (padded / min_padded - 1.0) * 32.0 + abs(math.log2(tile / target))
        if best_score is None or score < best_score:
            best_tile, best_score = tile, score
        tile += unit
    return best_tile, -(-total // best_tile) * best_tile


def _pick_groups(ng: int, unit: int, cap: int):
    """Column groups per tile: multiple of `unit`, <= max(cap, unit), chosen
    to minimize the padded group count (tie-break: larger group count keeps
    the static unroll efficient).  Returns (GPT, NGp)."""
    ng = max(int(ng), 1)
    cap = max(unit, cap)
    hi = min(cap, _round_up(ng, unit))
    best = None
    for gpt in range(unit, hi + 1, unit):
        padded = -(-ng // gpt) * gpt
        key = (padded, -gpt)
        if best is None or key < best[0]:
            best = (key, gpt, padded)
    return best[1], best[2]


def _make_kernel(join: str, gpt: int, width: int, xr_resident: bool):
    op = jnp.multiply if join == 'mul' else jnp.add   # 'cat' -> add of padded halves

    def kernel(xl_ref, xr_ref, o_ref):
        # xl_ref: (1, TM, W)           x_l rows, channels pre-tiled g times
        # xr_ref: (1, NGp or GPT, W)   x_r column groups (resident strip / tile)
        # o_ref : (1, TM, GPT*W)       lane-dense output tile
        base = pl.program_id(2) * gpt if xr_resident else 0
        for gi in range(gpt):          # small static unroll (gpt <= 16)
            xr_row = xr_ref[0, pl.ds(base + gi, 1), :]              # (1, W)
            slab = op(xl_ref[0], xr_row)                            # (TM, W)
            o_ref[0, :, gi * width:(gi + 1) * width] = slab.astype(o_ref.dtype)

    return kernel


def transform2d(x_l, x_r, join: str = 'cat'):
    """Pallas implementation of Transform2D.forward."""
    assert x_l.shape == x_r.shape
    assert x_l.dtype == x_r.dtype
    B, N, C = x_l.shape
    dtype = x_l.dtype

    if join == 'cat':
        # 'cat' == add of zero-padded halves; shares the add/mul kernel path
        # for the cost of one VPU op per output vreg (hidden under the
        # HBM-write roofline on all generations).
        zeros = jnp.zeros_like(x_l)
        xl_in = jnp.concatenate([x_l, zeros], axis=-1)     # (B, N, 2C)
        xr_in = jnp.concatenate([zeros, x_r], axis=-1)     # (B, N, 2C)
        Cp = 2 * C
    elif join in ('add', 'mul'):
        xl_in, xr_in = x_l, x_r
        Cp = C
    else:
        raise ValueError(f"unknown join: {join}")

    itemsize = jnp.dtype(dtype).itemsize
    sub = {4: 8, 2: 16, 1: 32}.get(itemsize, 8)            # sublane granularity
    g = 128 // math.gcd(Cp, 128)                           # output cols per 128-lane group
    W = g * Cp                                             # lanes per group (multiple of 128)
    ng = -(-N // g)                                        # natural column-group count

    # ~4 MiB output tiles: big enough to amortize the per-step overhead even
    # at v7x's 3.2 TB/s HBM, small enough to double-buffer inside 64 MiB VMEM.
    tile_elems = (4 << 20) // itemsize

    # Keep the whole x_r column strip resident in VMEM unless it is unusually
    # large; then the only per-step DMA is the output write-back.
    xr_resident = 2 * (ng + 16) * W * itemsize <= (12 << 20)
    gpt_unit = 1 if xr_resident else sub                   # tiled x_r needs 8-row blocks
    gpt_cap = max(gpt_unit, min(16, tile_elems // (8 * W)))  # bound the static unroll
    GPT, NGp = _pick_groups(ng, gpt_unit, gpt_cap)
    NCp = NGp * g                                          # padded output columns

    TM, NRp = _pick_tile(N, sub, max(sub, tile_elems // (GPT * W)))

    # ---- wrapper-side layout prep: all lane relayout happens here, once ----
    xl_pad = jnp.pad(xl_in, ((0, 0), (0, NRp - N), (0, 0)))
    xl_wide = jnp.tile(xl_pad, (1, 1, g)) if g > 1 else xl_pad       # (B, NRp, W)
    xr_pad = jnp.pad(xr_in, ((0, 0), (0, NCp - N), (0, 0)))
    xr_grp = xr_pad.reshape(B, NGp, W)                                # (B, NGp, W)

    if xr_resident:
        xr_spec = pl.BlockSpec((1, NGp, W), lambda i, b, j: (b, 0, 0))
        xr_bufs = 2 * NGp * W * itemsize
    else:
        xr_spec = pl.BlockSpec((1, GPT, W), lambda i, b, j: (b, j, 0))
        xr_bufs = 2 * GPT * W * itemsize

    out_tile_bytes = TM * GPT * W * itemsize
    xl_tile_bytes = TM * W * itemsize
    # Derived from actual need (double-buffered out + in tiles + headroom),
    # capped at 48 MiB so v7x's 64 MiB per-TC VMEM keeps compiler headroom.
    vmem_limit = int(min(48 << 20,
                         max(32 << 20,
                             2 * out_tile_bytes + 2 * xl_tile_bytes
                             + xr_bufs + (4 << 20))))

    grid = (NRp // TM, B, NGp // GPT)   # largest (row) axis first: v7x core split

    out_flat = pl.pallas_call(
        _make_kernel(join, GPT, W, xr_resident),
        out_shape=jax.ShapeDtypeStruct((B, NRp, NCp * Cp), dtype),
        grid_spec=pltpu.PrefetchScalarGridSpec(
            num_scalar_prefetch=0,
            grid=grid,
            in_specs=[
                pl.BlockSpec((1, TM, W), lambda i, b, j: (b, i, 0)),
                xr_spec,
            ],
            # (B, NRp, NCp*Cp) is row-major identical to (B, NRp, NCp, Cp);
            # the block's last dim GPT*W is a large multiple of 128 lanes so
            # the write-back DMA and all stores are dense and unmasked.
            out_specs=pl.BlockSpec((1, TM, GPT * W), lambda i, b, j: (b, i, j)),
        ),
        compiler_params=pltpu.CompilerParams(
            dimension_semantics=("parallel", "parallel", "parallel"),
            vmem_limit_bytes=vmem_limit,
        ),
        # TODO(synk): evaluate pipeline_mode=pl.Buffered(3) on the output spec;
        # default double-buffering already hides write-back at 4 MiB tiles.
    )(xl_wide, xr_grp)

    out = out_flat.reshape(B, NRp, NCp, Cp)[:, :N, :N, :]
    # TODO(synk): the remaining large win is fusing the downstream pairwise
    # consumer so the N^2*Cp tensor never round-trips HBM at all.
    return out


def transform2d_ref(x_l, x_r, join: str = 'cat'):
    """Pure-JAX reference mirroring the PyTorch forward."""
    B, N, C = x_l.shape
    xl_b = jnp.broadcast_to(x_l[:, :, None, :], (B, N, N, C))
    xr_b = jnp.broadcast_to(x_r[:, None, :, :], (B, N, N, C))
    if join == 'cat':
        return jnp.concatenate([xl_b, xr_b], axis=3)
    if join == 'add':
        return xl_b + xr_b
    if join == 'mul':
        return xl_b * xr_b
    raise ValueError(join)


if __name__ == "__main__":
    # Transform2D has no learnable parameters (__init__ only stores `join`).
    B, N, C = 2, 8, 32
    key = jax.random.PRNGKey(0)
    k1, k2 = jax.random.split(key)
    x_l = jax.random.normal(k1, (B, N, C), dtype=jnp.float32)
    x_r = jax.random.normal(k2, (B, N, C), dtype=jnp.float32)

    fwd = jax.jit(transform2d, static_argnames=("join",))

    ok = True
    for join in ("cat", "add", "mul"):
        out = jax.block_until_ready(fwd(x_l, x_r, join=join))
        ref = transform2d_ref(x_l, x_r, join=join)
        if out.shape != ref.shape or not bool(jnp.allclose(out, ref, atol=1e-6)):
            ok = False
            print(f"MISMATCH for join={join}")

    if ok:
        print("KERNEL_OK")
</pallas_src>

<mosaic_0001>
module attributes {stable_mosaic.version = 11 : i64} {
  func.func @kernel(%arg0: i32, %arg1: i32, %arg2: i32, %arg3: memref<1x8x128xf32, #tpu.memory_space<vmem>>, %arg4: memref<1x4x128xf32, #tpu.memory_space<vmem>>, %arg5: memref<1x8x512xf32, #tpu.memory_space<vmem>>) attributes {dimension_semantics = [#tpu.dimension_semantics<parallel>, #tpu.dimension_semantics<parallel>, #tpu.dimension_semantics<parallel>], iteration_bounds = array<i64: 1, 2, 1>, scalar_prefetch = 0 : i64, scratch_operands = 0 : i64, tpu.core_type = #tpu.core_type<tc>, window_params = [{transform_indices = @transform_0, window_bounds = array<i64: 1, 8, 128>}, {transform_indices = @transform_1, window_bounds = array<i64: 1, 4, 128>}, {transform_indices = @transform_2, window_bounds = array<i64: 1, 8, 512>}]} {
    %c4_i32 = arith.constant 4 : i32
    %0 = arith.muli %arg2, %c4_i32 : i32
    %c0_i32 = arith.constant 0 : i32
    %1 = arith.addi %0, %c0_i32 : i32
    %c0 = arith.constant 0 : index
    %2 = arith.index_cast %1 : i32 to index
    %c0_0 = arith.constant 0 : index
    %3 = vector.load %arg4[%c0, %2, %c0_0] : memref<1x4x128xf32, #tpu.memory_space<vmem>>, vector<1x1x128xf32>
    %4 = vector.shape_cast %3 : vector<1x1x128xf32> to vector<1x128xf32>
    %c0_1 = arith.constant 0 : index
    %c0_2 = arith.constant 0 : index
    %c0_3 = arith.constant 0 : index
    %5 = vector.load %arg3[%c0_1, %c0_2, %c0_3] : memref<1x8x128xf32, #tpu.memory_space<vmem>>, vector<1x8x128xf32>
    %6 = vector.shape_cast %5 : vector<1x8x128xf32> to vector<8x128xf32>
    %7 = vector.broadcast %4 : vector<1x128xf32> to vector<8x128xf32>
    %8 = arith.addf %6, %7 : vector<8x128xf32>
    %c0_4 = arith.constant 0 : index
    %c0_5 = arith.constant 0 : index
    %c0_6 = arith.constant 0 : index
    %9 = vector.load %arg5[%c0_4, %c0_5, %c0_6] : memref<1x8x512xf32, #tpu.memory_space<vmem>>, vector<1x8x128xf32>
    %10 = vector.shape_cast %9 : vector<1x8x128xf32> to vector<8x128xf32>
    %11 = vector.shape_cast %8 : vector<8x128xf32> to vector<1x8x128xf32>
    tpu.vector_store %arg5[%c0_4, %c0_5, %c0_6], %11 {strides = array<i32>} : memref<1x8x512xf32, #tpu.memory_space<vmem>>, vector<1x8x128xf32>,
    %c1_i32 = arith.constant 1 : i32
    %12 = arith.addi %0, %c1_i32 : i32
    %c0_7 = arith.constant 0 : index
    %13 = arith.index_cast %12 : i32 to index
    %c0_8 = arith.constant 0 : index
    %14 = vector.load %arg4[%c0_7, %13, %c0_8] : memref<1x4x128xf32, #tpu.memory_space<vmem>>, vector<1x1x128xf32>
    %15 = vector.shape_cast %14 : vector<1x1x128xf32> to vector<1x128xf32>
    %c0_9 = arith.constant 0 : index
    %c0_10 = arith.constant 0 : index
    %c0_11 = arith.constant 0 : index
    %16 = vector.load %arg3[%c0_9, %c0_10, %c0_11] : memref<1x8x128xf32, #tpu.memory_space<vmem>>, vector<1x8x128xf32>
    %17 = vector.shape_cast %16 : vector<1x8x128xf32> to vector<8x128xf32>
    %18 = vector.broadcast %15 : vector<1x128xf32> to vector<8x128xf32>
    %19 = arith.addf %17, %18 : vector<8x128xf32>
    %c0_12 = arith.constant 0 : index
    %c0_13 = arith.constant 0 : index
    %c128 = arith.constant 128 : index
    %20 = vector.load %arg5[%c0_12, %c0_13, %c128] : memref<1x8x512xf32, #tpu.memory_space<vmem>>, vector<1x8x128xf32>
    %21 = vector.shape_cast %20 : vector<1x8x128xf32> to vector<8x128xf32>
    %22 = vector.shape_cast %19 : vector<8x128xf32> to vector<1x8x128xf32>
    tpu.vector_store %arg5[%c0_12, %c0_13, %c128], %22 {strides = array<i32>} : memref<1x8x512xf32, #tpu.memory_space<vmem>>, vector<1x8x128xf32>,
    %c2_i32 = arith.constant 2 : i32
    %23 = arith.addi %0, %c2_i32 : i32
    %c0_14 = arith.constant 0 : index
    %24 = arith.index_cast %23 : i32 to index
    %c0_15 = arith.constant 0 : index
    %25 = vector.load %arg4[%c0_14, %24, %c0_15] : memref<1x4x128xf32, #tpu.memory_space<vmem>>, vector<1x1x128xf32>
    %26 = vector.shape_cast %25 : vector<1x1x128xf32> to vector<1x128xf32>
    %c0_16 = arith.constant 0 : index
    %c0_17 = arith.constant 0 : index
    %c0_18 = arith.constant 0 : index
    %27 = vector.load %arg3[%c0_16, %c0_17, %c0_18] : memref<1x8x128xf32, #tpu.memory_space<vmem>>, vector<1x8x128xf32>
    %28 = vector.shape_cast %27 : vector<1x8x128xf32> to vector<8x128xf32>
    %29 = vector.broadcast %26 : vector<1x128xf32> to vector<8x128xf32>
    %30 = arith.addf %28, %29 : vector<8x128xf32>
    %c0_19 = arith.constant 0 : index
    %c0_20 = arith.constant 0 : index
    %c256 = arith.constant 256 : index
    %31 = vector.load %arg5[%c0_19, %c0_20, %c256] : memref<1x8x512xf32, #tpu.memory_space<vmem>>, vector<1x8x128xf32>
    %32 = vector.shape_cast %31 : vector<1x8x128xf32> to vector<8x128xf32>
    %33 = vector.shape_cast %30 : vector<8x128xf32> to vector<1x8x128xf32>
    tpu.vector_store %arg5[%c0_19, %c0_20, %c256], %33 {strides = array<i32>} : memref<1x8x512xf32, #tpu.memory_space<vmem>>, vector<1x8x128xf32>,
    %c3_i32 = arith.constant 3 : i32
    %34 = arith.addi %0, %c3_i32 : i32
    %c0_21 = arith.constant 0 : index
    %35 = arith.index_cast %34 : i32 to index
    %c0_22 = arith.constant 0 : index
    %36 = vector.load %arg4[%c0_21, %35, %c0_22] : memref<1x4x128xf32, #tpu.memory_space<vmem>>, vector<1x1x128xf32>
    %37 = vector.shape_cast %36 : vector<1x1x128xf32> to vector<1x128xf32>
    %c0_23 = arith.constant 0 : index
    %c0_24 = arith.constant 0 : index
    %c0_25 = arith.constant 0 : index
    %38 = vector.load %arg3[%c0_23, %c0_24, %c0_25] : memref<1x8x128xf32, #tpu.memory_space<vmem>>, vector<1x8x128xf32>
    %39 = vector.shape_cast %38 : vector<1x8x128xf32> to vector<8x128xf32>
    %40 = vector.broadcast %37 : vector<1x128xf32> to vector<8x128xf32>
    %41 = arith.addf %39, %40 : vector<8x128xf32>
    %c0_26 = arith.constant 0 : index
    %c0_27 = arith.constant 0 : index
    %c384 = arith.constant 384 : index
    %42 = vector.load %arg5[%c0_26, %c0_27, %c384] : memref<1x8x512xf32, #tpu.memory_space<vmem>>, vector<1x8x128xf32>
    %43 = vector.shape_cast %42 : vector<1x8x128xf32> to vector<8x128xf32>
    %44 = vector.shape_cast %41 : vector<8x128xf32> to vector<1x8x128xf32>
    tpu.vector_store %arg5[%c0_26, %c0_27, %c384], %44 {strides = array<i32>} : memref<1x8x512xf32, #tpu.memory_space<vmem>>, vector<1x8x128xf32>,
    return
  }
  func.func @transform_0(%arg0: i32, %arg1: i32, %arg2: i32) -> (i32, i32, i32) {
    %c0_i32 = arith.constant 0 : i32
    %c0_i32_0 = arith.constant 0 : i32
    return %arg1, %arg0, %c0_i32 : i32, i32, i32
  }
  func.func @transform_1(%arg0: i32, %arg1: i32, %arg2: i32) -> (i32, i32, i32) {
    %c0_i32 = arith.constant 0 : i32
    %c0_i32_0 = arith.constant 0 : i32
    %c0_i32_1 = arith.constant 0 : i32
    return %arg1, %c0_i32, %c0_i32_0 : i32, i32, i32
  }
  func.func @transform_2(%arg0: i32, %arg1: i32, %arg2: i32) -> (i32, i32, i32) {
    %c0_i32 = arith.constant 0 : i32
    return %arg1, %arg0, %arg2 : i32, i32, i32
  }
}

</mosaic_0001>

<bundles_post_ra>
// kernel: tile.9
= control target key start
LH: loop header
LB: loop body
LE: loop exit
PB: predicated region body
PF: predicated region fallthrough
CT: control target
= control target key end

     0   :  { %vm83_vm0 = vcmask 1047556   ;;  %vm85_vm1 = vcmask 523264   ;;  %vm104_vm2 = vcmask 1048064   ;;  %s226_s0 = inlined_call_operand.vmem [shape: f32[2,8,2,64], index: 0, kind: input, shape index: {}]   ;;  %s227_s1 = inlined_call_operand.vmem [shape: f32[2,8,128], index: 1, kind: output, shape index: {}]  }
   0x1   :  { %v139_v0 = vld [vmem:[%s226_s0 + $0xe] sm:$0x3]  ;;  %v140_v1 = vld [vmem:[%s226_s0 + $0xc] sm:$0x3]  ;;  %v141_v2 = vld [vmem:[%s226_s0 + $0xa] sm:$0x3] }
   0x2   :  { %49 = vst [vmem:[#allocation0 + $0x38] sm:$0x3] %v139_v0  ;;  %54 = vst [vmem:[#allocation0 + $0x30] sm:$0x3] %v140_v1  ;;  %v142_v3 = vld [vmem:[%s226_s0 + $0x8] sm:$0x3] }
   0x3   :  { %59 = vst [vmem:[#allocation0 + $0x28] sm:$0x3] %v141_v2  ;;  %v143_v4 = vld [vmem:[%s226_s0 + $0x6] sm:$0x3]  ;;  %v144_v5 = vld [vmem:[%s226_s0 + $0x4] sm:$0x3] }
   0x4   :  { %64 = vst [vmem:[#allocation0 + $0x20] sm:$0x3] %v142_v3  ;;  %69 = vst [vmem:[#allocation0 + $0x18] sm:$0x3] %v143_v4  ;;  %v145_v6 = vld [vmem:[%s226_s0 + $0x2] sm:$0x3] }
   0x5   :  { %74 = vst [vmem:[#allocation0 + $0x10] sm:$0x3] %v144_v5  ;;  %v79_v7 = vld [vmem:[%s226_s0] sm:$0x3]  ;;  %78 = vst [vmem:[#allocation0 + $0x8] sm:$0x3] %v145_v6 }
   0x6   :  { %80 = vst [vmem:[#allocation0] sm:$0x3] %v79_v7  ;;  %v131_v8 = vld [vmem:[%s226_s0 + $0x1e] sm:$0x3]  ;;  %v132_v9 = vld [vmem:[%s226_s0 + $0x1c] sm:$0x3] }
   0x7   :  { %v133_v10 = vld [vmem:[%s226_s0 + $0x1a] sm:$0x3]  ;;  %9 = vst [vmem:[#allocation0 + $0x78] sm:$0x3] %v131_v8  ;;  %14 = vst [vmem:[#allocation0 + $0x70] sm:$0x3] %v132_v9 }
   0x8   :  { %19 = vst [vmem:[#allocation0 + $0x68] sm:$0x3] %v133_v10  ;;  %v134_v11 = vld [vmem:[%s226_s0 + $0x18] sm:$0x3]  ;;  %v135_v12 = vld [vmem:[%s226_s0 + $0x16] sm:$0x3] }
   0x9   :  { %v136_v13 = vld [vmem:[%s226_s0 + $0x14] sm:$0x3]  ;;  %24 = vst [vmem:[#allocation0 + $0x60] sm:$0x3] %v134_v11  ;;  %29 = vst [vmem:[#allocation0 + $0x58] sm:$0x3] %v135_v12 }
   0xa   :  { %34 = vst [vmem:[#allocation0 + $0x50] sm:$0x3] %v136_v13  ;;  %v137_v14 = vld [vmem:[%s226_s0 + $0x12] sm:$0x3]  ;;  %v138_v15 = vld [vmem:[%s226_s0 + $0x10] sm:$0x3] }
   0xb   :  { %39 = vst [vmem:[#allocation0 + $0x48] sm:$0x3] %v137_v14  ;;  %44 = vst [vmem:[#allocation0 + $0x40] sm:$0x3] %v138_v15  ;;  %s149_s0 = smov 64  }
   0xc   :  { %v99_v16 = vld [vmem:[#allocation0 + $0x1] ss:$8 sm:$0xf0]   ;;  %v82_v17 = vld [vmem:[#allocation0] ss:$8 sm:$0xf0]  }
   0xd   :  { %v97_v18 = vld [vmem:[#allocation0 + $0x1] ss:$8 sm:$0xf]   ;;  %v81_v19 = vld [vmem:[#allocation0] ss:$8 sm:$0xf]  }
   0xe   :  { %v101_v20 = vsel %vm83_vm0, %v99_v16, %v97_v18  ;;  %v84_v21 = vsel %vm83_vm0, %v82_v17, %v81_v19 }
   0xf   :  { %102 = vrot.lane.b32.xlu0 %v101_v20, %s149_s0  ;;  %86 = vst.msk [vmem:[%s227_s1] sm:$0xff] %vm85_vm1, %v84_v21  }
  0x10   :  { %v109_v22 = vld [vmem:[#allocation0 + $0x41] ss:$8 sm:$0xf0]   ;;  %v90_v23 = vld [vmem:[#allocation0 + $0x40] ss:$8 sm:$0xf0]  }
  0x12   :  { %v107_v24 = vld [vmem:[#allocation0 + $0x41] ss:$8 sm:$0xf]   ;;  %v88_v25 = vld [vmem:[#allocation0 + $0x40] ss:$8 sm:$0xf]  }
  0x13   :  { %v111_v26 = vsel %vm83_vm0, %v109_v22, %v107_v24  ;;  %v92_v27 = vsel %vm83_vm0, %v90_v23, %v88_v25 }
  0x14   :  { %146 = vst.msk [vmem:[%s227_s1 + $0x8] sm:$0xff] %vm85_vm1, %v92_v27   ;;  %112 = vrot.lane.b32.xlu0 %v111_v26, %s149_s0 }
  0x81   :  { %v103_v28 = vpop.permute.xlu0 %102  }
  0x82   :  { %105 = vst.msk [vmem:[%s227_s1] sm:$0xff] %vm104_vm2, %v103_v28  }
  0x86   :  { %v113_v29 = vpop.permute.xlu0 %112  }
  0x87   :  { %147 = vst.msk [vmem:[%s227_s1 + $0x8] sm:$0xff] %vm104_vm2, %v113_v29  }

// kernel: transform2d.1
= control target key start
LH: loop header
LB: loop body
LE: loop exit
PB: predicated region body
PF: predicated region fallthrough
CT: control target
= control target key end

     0   :  { %s457_s9 = smov 0   ;;  %s459_s10 = smov 0   ;;  %s490_s0 = inlined_call_operand.vmem [shape: f32[2,8,128], index: 0, kind: input, shape index: {}]   ;;  %s491_s1 = inlined_call_operand.vmem [shape: f32[2,4,128], index: 1, kind: input, shape index: {}]   ;;  %s492_s2 = inlined_call_operand.vmem [shape: f32[2,8,512], index: 2, kind: output, shape index: {}]  }
   0x1   :  { %s461_s11 = smov 0  }
   0x2 LB: > { %s27_s12 = sadd.s32 1, %s436_s10  ;;  %p379_p0 = scmp.ge.s32.totalorder %s440_s11, 1  ;;  %s440_s11 = sphi %s461_s11, %s12_s11   ;;  %s436_s10 = sphi %s459_s10, %s494_s10   ;;  %s432_s9 = sphi %s457_s9, %s493_s9  }
   0x3   : > { %p29_p1 = scmp.ge.s32.totalorder %s27_s12, 2  ;;  %p148_p2 = scmp.lt.s32.totalorder %s440_s11, 3 }
   0x5   : > { %s496_s12 = smov (%p29_p1, %s27_s12), 0  ;;  %p149_p3 = pnand %p379_p0, %p148_p2 }
   0x6   : > { %p184_p4 = scmp.lt.s32.totalorder (!%p149_p3), %s432_s9, 1 }
   0x7   : > { %152 = sbr.rel (%p149_p3) target bundleno = 21 (0x15), region = 28 }
   0xc   : > { %s498_s9 = smov (!%p184_p4, %s432_s9), 1 }
   0xd   : > { %s380_s13 = sshll.u32 %s498_s9, 3  ;;  %s381_s14 = sshll.u32 %s498_s9, 2 }
   0xe   : > { %s190_s17 = scalar_lea.vmem %s490_s0, %s380_s13  ;;  %s194_s20 = scalar_lea.vmem %s491_s1, %s381_s14 }
   0xf   : > { %s393_s21 = sshll.u32 %s498_s9, 5  ;;  %v384_v0 = vld [vmem:[%s194_s20] ss:$0 sm:$0xff]  ;;  %v386_v2 = vld [vmem:[%s194_s20 + $0x1] ss:$0 sm:$0xff] }
  0x10   : > { %v212_v1 = vld [vmem:[%s190_s17] sm:$0xff]  ;;  %s207_s24 = scalar_lea.vmem %s492_s2, %s393_s21 }
  0x11   : > { %v217_v3 = vadd.f32 %v384_v0, %v212_v1  ;;  %v227_v4 = vadd.f32 %v386_v2, %v212_v1  ;;  %v388_v5 = vld [vmem:[%s194_s20 + $0x2] ss:$0 sm:$0xff]  ;;  %v390_v6 = vld [vmem:[%s194_s20 + $0x3] ss:$0 sm:$0xff] }
  0x12   : > { %v237_v7 = vadd.f32 %v388_v5, %v212_v1  ;;  %v247_v8 = vadd.f32 %v390_v6, %v212_v1 }
  0x13   : > { %218 = vst [vmem:[%s207_s24] sm:$0xff] %v217_v3  ;;  %228 = vst [vmem:[%s207_s24 + $0x8] sm:$0xff] %v227_v4 }
  0x14   : > { %238 = vst [vmem:[%s207_s24 + $0x10] sm:$0xff] %v237_v7  ;;  %248 = vst [vmem:[%s207_s24 + $0x18] sm:$0xff] %v247_v8 }
  0x15 PF: > { %s12_s11 = sadd.s32 1, %s440_s11   ;;  %s493_s9 = smov %s436_s10 }
  0x16   : > { %p9_p5 = scmp.ge.s32.totalorder %s12_s11, 4   ;;  %s494_s10 = smov %s496_s12 }
  0x18   :  { %11 = sbr.rel (!%p9_p5) target bundleno = 2 (0x2), region = 65 }

</bundles_post_ra>
